<compile_context>
chip_gen: v5e
topology: v5e:2x2
jax: 0.10.0
libtpu: 0.0.40
codegen_flags: <defaults>
</compile_context>

<pallas_src>
import functools
import math

import jax
import jax.numpy as jnp
from jax.experimental import pallas as pl
from jax.experimental.pallas import tpu as pltpu

LN_EPS = 1e-6  # eps of the custom LayerNorm


def _encoder_block_kernel(
    lens_ref,                                    # scalar-prefetch: (B,) int32 valid lengths (SMEM)
    x_ref,                                       # (1, S, D) block: one batch row per grid step
    wqkv_ref, bqkv_ref, wo_ref, bo_ref,
    g1_ref, beta1_ref,
    w1_ref, b1_ref, w2_ref, b2_ref,
    g2_ref, beta2_ref,
    o_ref,
    *, n_heads, d_k, d_v, compute_dtype,
):
    f32 = jnp.float32
    cdt = compute_dtype
    _, S, D = x_ref.shape
    H = n_heads
    hdk = H * d_k
    b = pl.program_id(0)

    x = x_ref[...].astype(f32).reshape(S, D)                            # (S, D) f32

    # ---- fused Q/K/V projection (1/sqrt(d_k) already folded into the Q columns) ----
    qkv = jnp.dot(x.astype(cdt), wqkv_ref[...],
                  preferred_element_type=f32) + bqkv_ref[...]           # (S, 2*hdk + H*d_v) f32
    qkv_c = qkv.astype(cdt)

    # ---- key-padding additive bias: ONE vectorized compare per grid step ----
    kpos = jax.lax.broadcasted_iota(jnp.int32, (1, S), 1)
    bias = jnp.where(kpos < lens_ref[b], 0.0, -1e9)                     # (1, S) f32

    # ---- per-head attention: 2D MXU dots straight off lane slices of qkv ----
    # No axis-0 head stacking / concats; only one (S, S) f32 score tile live per head.
    trans_b = (((1,), (1,)), ((), ()))                                  # contract last dims (q @ k.T)
    ctx_heads = []
    for h in range(H):
        qh = qkv_c[:, h * d_k:(h + 1) * d_k]                            # (S, d_k)
        kh = qkv_c[:, hdk + h * d_k: hdk + (h + 1) * d_k]               # (S, d_k)
        vh = qkv_c[:, 2 * hdk + h * d_v: 2 * hdk + (h + 1) * d_v]       # (S, d_v)
        s = jax.lax.dot_general(qh, kh, trans_b,
                                preferred_element_type=f32) + bias      # (S, S) f32
        s = s - jnp.max(s, axis=-1, keepdims=True)
        p = jnp.exp(s)
        p = p * pl.reciprocal(jnp.sum(p, axis=-1, keepdims=True), approx=True)
        ctx_heads.append(
            jnp.dot(p.astype(cdt), vh, preferred_element_type=f32).astype(cdt))  # (S, d_v)

    # ---- single lane concat -> lane-dense input of ONE output projection ----
    ctx = jnp.concatenate(ctx_heads, axis=-1)                           # (S, H*d_v) bf16
    attn = jnp.dot(ctx, wo_ref[...], preferred_element_type=f32) + bo_ref[...]   # (S, D) f32
    # TODO(synk): dropout skipped (inference / eval-mode identity).

    # ---- residual + layernorm1 (f32) ----
    h1 = x + attn
    mu1 = jnp.mean(h1, axis=-1, keepdims=True)
    var1 = jnp.mean((h1 - mu1) ** 2, axis=-1, keepdims=True)
    h1 = (h1 - mu1) * jax.lax.rsqrt(var1 + LN_EPS) * g1_ref[...] + beta1_ref[...]

    # ---- pointwise feed-forward: Linear -> ReLU -> Linear ----
    # TODO(synk): tile over d_ff with an inner "arbitrary" grid axis at realistic d_ff.
    f = jnp.dot(h1.astype(cdt), w1_ref[...], preferred_element_type=f32) + b1_ref[...]
    f = jnp.maximum(f, 0.0)
    f = jnp.dot(f.astype(cdt), w2_ref[...], preferred_element_type=f32) + b2_ref[...]

    # ---- residual + layernorm2 (f32) ----
    h2 = h1 + f
    mu2 = jnp.mean(h2, axis=-1, keepdims=True)
    var2 = jnp.mean((h2 - mu2) ** 2, axis=-1, keepdims=True)
    out = (h2 - mu2) * jax.lax.rsqrt(var2 + LN_EPS) * g2_ref[...] + beta2_ref[...]

    o_ref[...] = out.reshape(1, S, D).astype(o_ref.dtype)


def prepare_params(params, *, d_k, compute_dtype=jnp.bfloat16):
    """One-time weight prep (QKV fusion, 1/sqrt(d_k) fold, bf16 cast).

    Hoisted out of the per-call path: at realistic D/d_ff this avoids re-concatenating and
    re-casting tens of MiB of weights in XLA before every kernel launch.
    """
    f32 = jnp.float32
    cdt = compute_dtype
    scale = 1.0 / math.sqrt(d_k)
    wqkv = jnp.concatenate(
        [params["wq"] * scale, params["wk"], params["wv"]], axis=1).astype(cdt)
    bqkv = jnp.concatenate(
        [params["bq"] * scale, params["bk"], params["bv"]], axis=1).astype(f32)
    return (
        wqkv, bqkv,
        params["wo"].astype(cdt), params["bo"].astype(f32),
        params["g1"].astype(f32), params["beta1"].astype(f32),
        params["w1"].astype(cdt), params["b1"].astype(f32),
        params["w2"].astype(cdt), params["b2"].astype(f32),
        params["g2"].astype(f32), params["beta2"].astype(f32),
    )


def encoder_block(x, valid_len, prepared_weights, *, n_heads, d_k, d_v,
                  compute_dtype=jnp.bfloat16):
    """x: (B, S, D) f32 activations; valid_len: (B,) int32 number of valid keys per row;
    prepared_weights: output of prepare_params (computed once, reused across calls)."""
    B, S, D = x.shape
    w_args = list(prepared_weights)

    def rep_spec(arr):
        # Whole (small) weight array resident every step; block index never changes.
        # TODO(synk): single-buffer (pipeline_mode=pl.Buffered(1), or pl.ANY + one-time VMEM
        #             copy) once D/d_ff are large enough for double-buffered weights to matter.
        return pl.BlockSpec(arr.shape, lambda b, lens, nd=arr.ndim: (0,) * nd)

    kernel = functools.partial(
        _encoder_block_kernel, n_heads=n_heads, d_k=d_k, d_v=d_v,
        compute_dtype=compute_dtype)

    return pl.pallas_call(
        kernel,
        out_shape=jax.ShapeDtypeStruct((B, S, D), x.dtype),
        grid_spec=pltpu.PrefetchScalarGridSpec(
            num_scalar_prefetch=1,                         # valid_len lives in SMEM
            grid=(B,),                                     # one batch row per step (grid >= 2)
            in_specs=[
                pl.BlockSpec((1, S, D), lambda b, lens: (b, 0, 0)),   # x row
            ] + [rep_spec(a) for a in w_args],                        # weights: whole arrays
            out_specs=pl.BlockSpec((1, S, D), lambda b, lens: (b, 0, 0)),
        ),
        compiler_params=pltpu.CompilerParams(
            dimension_semantics=("parallel",),
            vmem_limit_bytes=48 * 1024 * 1024),            # < v7x 64 MiB physical; ample on v5e/v6e
    )(valid_len.astype(jnp.int32), x, *w_args)


def _reference(x, valid_len, params, *, n_heads, d_k, d_v, compute_dtype=jnp.bfloat16):
    """Pure-JAX reference mirroring the module math (same bf16 matmul quantization)."""
    f32 = jnp.float32
    cdt = compute_dtype
    p = {k: v.astype(f32) for k, v in params.items()}
    B, S, D = x.shape
    H = n_heads

    def ln(h, g, b):
        mu = jnp.mean(h, axis=-1, keepdims=True)
        var = jnp.mean((h - mu) ** 2, axis=-1, keepdims=True)
        return (h - mu) * jax.lax.rsqrt(var + LN_EPS) * g + b

    def mm(a, w):
        return jnp.dot(a.astype(cdt), w.astype(cdt), preferred_element_type=f32)

    x32 = x.astype(f32)
    q = (mm(x32, p["wq"]) + p["bq"]) * (1.0 / math.sqrt(d_k))
    k = mm(x32, p["wk"]) + p["bk"]
    v = mm(x32, p["wv"]) + p["bv"]
    qh = q.reshape(B, S, H, d_k).transpose(0, 2, 1, 3).astype(cdt)
    kh = k.reshape(B, S, H, d_k).transpose(0, 2, 1, 3).astype(cdt)
    vh = v.reshape(B, S, H, d_v).transpose(0, 2, 1, 3).astype(cdt)
    s = jnp.einsum("bhqd,bhkd->bhqk", qh, kh, preferred_element_type=f32)
    kmask = jnp.arange(S)[None, :] < valid_len[:, None]                 # (B, S)
    s = s + jnp.where(kmask, 0.0, -1e9)[:, None, None, :]
    a = jax.nn.softmax(s, axis=-1)
    ctx = jnp.einsum("bhqk,bhkd->bhqd", a.astype(cdt), vh, preferred_element_type=f32)
    ctx = ctx.transpose(0, 2, 1, 3).reshape(B, S, H * d_v)
    attn = mm(ctx, p["wo"]) + p["bo"]
    h1 = ln(x32 + attn, p["g1"], p["beta1"])
    f = jnp.maximum(mm(h1, p["w1"]) + p["b1"], 0.0)
    f = mm(f, p["w2"]) + p["b2"]
    return ln(h1 + f, p["g2"], p["beta2"])


def make_params(key, n_heads, d_model, d_ff, d_k, d_v):
    ks = jax.random.split(key, 8)
    init = lambda k, shape, fan_in: (jax.random.normal(k, shape, jnp.float32)
                                     / math.sqrt(fan_in))
    return {
        "wq": init(ks[0], (d_model, n_heads * d_k), d_model),
        "bq": jnp.zeros((1, n_heads * d_k), jnp.float32),
        "wk": init(ks[1], (d_model, n_heads * d_k), d_model),
        "bk": jnp.zeros((1, n_heads * d_k), jnp.float32),
        "wv": init(ks[2], (d_model, n_heads * d_v), d_model),
        "bv": jnp.zeros((1, n_heads * d_v), jnp.float32),
        "wo": init(ks[3], (n_heads * d_v, d_model), n_heads * d_v),
        "bo": jnp.zeros((1, d_model), jnp.float32),
        "g1": jnp.ones((1, d_model), jnp.float32),
        "beta1": jnp.zeros((1, d_model), jnp.float32),
        "w1": init(ks[4], (d_model, d_ff), d_model),
        "b1": jax.random.normal(ks[5], (1, d_ff), jnp.float32) * 0.02,
        "w2": init(ks[6], (d_ff, d_model), d_ff),
        "b2": jax.random.normal(ks[7], (1, d_model), jnp.float32) * 0.02,
        "g2": jnp.ones((1, d_model), jnp.float32),
        "beta2": jnp.zeros((1, d_model), jnp.float32),
    }


if __name__ == "__main__":
    # Small config: n_heads=4, d_model=32, d_ff=64, d_k=d_v=8, p_drop inactive (eval mode).
    B, S, D = 2, 8, 32
    N_HEADS, D_FF, D_K, D_V = 4, 64, 8, 8

    root = jax.random.PRNGKey(0)
    kx, kp = jax.random.split(root)
    x = jax.random.normal(kx, (B, S, D), jnp.float32)

    # Padding-style mask: batch 0 sees all 8 keys, batch 1 only the first 6.
    valid_len = jnp.array([8, 6], jnp.int32)

    params = make_params(kp, N_HEADS, D, D_FF, D_K, D_V)
    prepared = prepare_params(params, d_k=D_K)          # one-time weight fusion / bf16 cast
    prepared = jax.block_until_ready(prepared)

    out = encoder_block(x, valid_len, prepared, n_heads=N_HEADS, d_k=D_K, d_v=D_V)
    out = jax.block_until_ready(out)

    ref = _reference(x, valid_len, params, n_heads=N_HEADS, d_k=D_K, d_v=D_V)
    assert out.shape == (B, S, D)
    err = float(jnp.max(jnp.abs(out - ref)))
    assert err < 2e-2, err
    print("KERNEL_OK")
</pallas_src>

<mosaic_0001>
module attributes {stable_mosaic.version = 11 : i64} {
  func.func @_encoder_block_kernel(%arg0: i32, %arg1: memref<2xi32, #tpu.memory_space<smem>>, %arg2: memref<1x8x32xf32, #tpu.memory_space<vmem>>, %arg3: memref<32x96xbf16, #tpu.memory_space<vmem>>, %arg4: memref<1x96xf32, #tpu.memory_space<vmem>>, %arg5: memref<32x32xbf16, #tpu.memory_space<vmem>>, %arg6: memref<1x32xf32, #tpu.memory_space<vmem>>, %arg7: memref<1x32xf32, #tpu.memory_space<vmem>>, %arg8: memref<1x32xf32, #tpu.memory_space<vmem>>, %arg9: memref<32x64xbf16, #tpu.memory_space<vmem>>, %arg10: memref<1x64xf32, #tpu.memory_space<vmem>>, %arg11: memref<64x32xbf16, #tpu.memory_space<vmem>>, %arg12: memref<1x32xf32, #tpu.memory_space<vmem>>, %arg13: memref<1x32xf32, #tpu.memory_space<vmem>>, %arg14: memref<1x32xf32, #tpu.memory_space<vmem>>, %arg15: memref<1x8x32xf32, #tpu.memory_space<vmem>>) attributes {dimension_semantics = [#tpu.dimension_semantics<parallel>], iteration_bounds = array<i64: 2>, scalar_prefetch = 1 : i64, scratch_operands = 0 : i64, tpu.core_type = #tpu.core_type<tc>, window_params = [{transform_indices = @transform_0, window_bounds = array<i64: 1, 8, 32>}, {pipeline_mode = #tpu.pipeline_mode<synchronous>, transform_indices = @transform_1, window_bounds = array<i64: 32, 96>}, {pipeline_mode = #tpu.pipeline_mode<synchronous>, transform_indices = @transform_2, window_bounds = array<i64: 1, 96>}, {pipeline_mode = #tpu.pipeline_mode<synchronous>, transform_indices = @transform_3, window_bounds = array<i64: 32, 32>}, {pipeline_mode = #tpu.pipeline_mode<synchronous>, transform_indices = @transform_4, window_bounds = array<i64: 1, 32>}, {pipeline_mode = #tpu.pipeline_mode<synchronous>, transform_indices = @transform_5, window_bounds = array<i64: 1, 32>}, {pipeline_mode = #tpu.pipeline_mode<synchronous>, transform_indices = @transform_6, window_bounds = array<i64: 1, 32>}, {pipeline_mode = #tpu.pipeline_mode<synchronous>, transform_indices = @transform_7, window_bounds = array<i64: 32, 64>}, {pipeline_mode = #tpu.pipeline_mode<synchronous>, transform_indices = @transform_8, window_bounds = array<i64: 1, 64>}, {pipeline_mode = #tpu.pipeline_mode<synchronous>, transform_indices = @transform_9, window_bounds = array<i64: 64, 32>}, {pipeline_mode = #tpu.pipeline_mode<synchronous>, transform_indices = @transform_10, window_bounds = array<i64: 1, 32>}, {pipeline_mode = #tpu.pipeline_mode<synchronous>, transform_indices = @transform_11, window_bounds = array<i64: 1, 32>}, {pipeline_mode = #tpu.pipeline_mode<synchronous>, transform_indices = @transform_12, window_bounds = array<i64: 1, 32>}, {transform_indices = @transform_13, window_bounds = array<i64: 1, 8, 32>}]} {
    %c0 = arith.constant 0 : index
    %c0_0 = arith.constant 0 : index
    %c0_1 = arith.constant 0 : index
    %0 = vector.load %arg2[%c0, %c0_0, %c0_1] : memref<1x8x32xf32, #tpu.memory_space<vmem>>, vector<1x8x32xf32>
    %1 = vector.shape_cast %0 : vector<1x8x32xf32> to vector<8x32xf32>
    %2 = arith.truncf %1 : vector<8x32xf32> to vector<8x32xbf16>
    %c0_2 = arith.constant 0 : index
    %c0_3 = arith.constant 0 : index
    %3 = vector.load %arg3[%c0_2, %c0_3] : memref<32x96xbf16, #tpu.memory_space<vmem>>, vector<32x96xbf16>
    %cst = arith.constant dense<0.000000e+00> : vector<8x96xf32>
    %4 = tpu.matmul %2, %3, %cst {dimension_numbers = #tpu.dot_dimension_numbers<[1], [0], [0], [1], [0, 0, 1, 1], [], []>} : vector<8x32xbf16>, vector<32x96xbf16>, vector<8x96xf32> -> vector<8x96xf32>
    %c0_4 = arith.constant 0 : index
    %c0_5 = arith.constant 0 : index
    %5 = vector.load %arg4[%c0_4, %c0_5] : memref<1x96xf32, #tpu.memory_space<vmem>>, vector<1x96xf32>
    %6 = vector.broadcast %5 : vector<1x96xf32> to vector<8x96xf32>
    %7 = arith.addf %4, %6 : vector<8x96xf32>
    %8 = arith.truncf %7 : vector<8x96xf32> to vector<8x96xbf16>
    %9 = tpu.iota {dimensions = array<i32: 1>} : vector<1x8xi32>
    %10 = arith.index_cast %arg0 : i32 to index
    %11 = memref.load %arg1[%10] : memref<2xi32, #tpu.memory_space<smem>>
    %12 = vector.broadcast %11 : i32 to vector<1x8xi32>
    %13 = arith.cmpi slt, %9, %12 : vector<1x8xi32>
    %cst_6 = arith.constant 0.000000e+00 : f32
    %cst_7 = arith.constant -1.000000e+09 : f32
    %14 = vector.broadcast %cst_6 : f32 to vector<1x8xf32>
    %15 = vector.broadcast %cst_7 : f32 to vector<1x8xf32>
    %16 = arith.select %13, %14, %15 : vector<1x8xi1>, vector<1x8xf32>
    %17 = vector.extract_strided_slice %8 {offsets = [0, 0], sizes = [8, 8], strides = [1, 1]} : vector<8x96xbf16> to vector<8x8xbf16>
    %18 = vector.extract_strided_slice %8 {offsets = [0, 32], sizes = [8, 8], strides = [1, 1]} : vector<8x96xbf16> to vector<8x8xbf16>
    %19 = vector.extract_strided_slice %8 {offsets = [0, 64], sizes = [8, 8], strides = [1, 1]} : vector<8x96xbf16> to vector<8x8xbf16>
    %cst_8 = arith.constant dense<0.000000e+00> : vector<8x8xf32>
    %20 = tpu.matmul %17, %18, %cst_8 {dimension_numbers = #tpu.dot_dimension_numbers<[1], [1], [0], [0], [0, 0, 1, 0], [], []>} : vector<8x8xbf16>, vector<8x8xbf16>, vector<8x8xf32> -> vector<8x8xf32>
    %21 = vector.broadcast %16 : vector<1x8xf32> to vector<8x8xf32>
    %22 = arith.addf %20, %21 : vector<8x8xf32>
    %cst_9 = arith.constant dense<0xFF800000> : vector<8xf32>
    %23 = vector.multi_reduction <maximumf>, %22, %cst_9 [1] : vector<8x8xf32> to vector<8xf32>
    %24 = vector.shape_cast %23 : vector<8xf32> to vector<8x1xf32>
    %25 = vector.broadcast %24 : vector<8x1xf32> to vector<8x8xf32>
    %26 = arith.subf %22, %25 : vector<8x8xf32>
    %27 = math.exp %26 : vector<8x8xf32>
    %cst_10 = arith.constant dense<0.000000e+00> : vector<8xf32>
    %28 = vector.multi_reduction <add>, %27, %cst_10 [1] : vector<8x8xf32> to vector<8xf32>
    %29 = vector.shape_cast %28 : vector<8xf32> to vector<8x1xf32>
    %30 = tpu.reciprocal %29 {approx = true} : vector<8x1xf32> -> vector<8x1xf32>
    %31 = vector.broadcast %30 : vector<8x1xf32> to vector<8x8xf32>
    %32 = arith.mulf %27, %31 : vector<8x8xf32>
    %33 = arith.truncf %32 : vector<8x8xf32> to vector<8x8xbf16>
    %cst_11 = arith.constant dense<0.000000e+00> : vector<8x8xf32>
    %34 = tpu.matmul %33, %19, %cst_11 {dimension_numbers = #tpu.dot_dimension_numbers<[1], [0], [0], [1], [0, 0, 1, 1], [], []>} : vector<8x8xbf16>, vector<8x8xbf16>, vector<8x8xf32> -> vector<8x8xf32>
    %35 = arith.truncf %34 : vector<8x8xf32> to vector<8x8xbf16>
    %36 = vector.extract_strided_slice %8 {offsets = [0, 8], sizes = [8, 8], strides = [1, 1]} : vector<8x96xbf16> to vector<8x8xbf16>
    %37 = vector.extract_strided_slice %8 {offsets = [0, 40], sizes = [8, 8], strides = [1, 1]} : vector<8x96xbf16> to vector<8x8xbf16>
    %38 = vector.extract_strided_slice %8 {offsets = [0, 72], sizes = [8, 8], strides = [1, 1]} : vector<8x96xbf16> to vector<8x8xbf16>
    %cst_12 = arith.constant dense<0.000000e+00> : vector<8x8xf32>
    %39 = tpu.matmul %36, %37, %cst_12 {dimension_numbers = #tpu.dot_dimension_numbers<[1], [1], [0], [0], [0, 0, 1, 0], [], []>} : vector<8x8xbf16>, vector<8x8xbf16>, vector<8x8xf32> -> vector<8x8xf32>
    %40 = vector.broadcast %16 : vector<1x8xf32> to vector<8x8xf32>
    %41 = arith.addf %39, %40 : vector<8x8xf32>
    %cst_13 = arith.constant dense<0xFF800000> : vector<8xf32>
    %42 = vector.multi_reduction <maximumf>, %41, %cst_13 [1] : vector<8x8xf32> to vector<8xf32>
    %43 = vector.shape_cast %42 : vector<8xf32> to vector<8x1xf32>
    %44 = vector.broadcast %43 : vector<8x1xf32> to vector<8x8xf32>
    %45 = arith.subf %41, %44 : vector<8x8xf32>
    %46 = math.exp %45 : vector<8x8xf32>
    %cst_14 = arith.constant dense<0.000000e+00> : vector<8xf32>
    %47 = vector.multi_reduction <add>, %46, %cst_14 [1] : vector<8x8xf32> to vector<8xf32>
    %48 = vector.shape_cast %47 : vector<8xf32> to vector<8x1xf32>
    %49 = tpu.reciprocal %48 {approx = true} : vector<8x1xf32> -> vector<8x1xf32>
    %50 = vector.broadcast %49 : vector<8x1xf32> to vector<8x8xf32>
    %51 = arith.mulf %46, %50 : vector<8x8xf32>
    %52 = arith.truncf %51 : vector<8x8xf32> to vector<8x8xbf16>
    %cst_15 = arith.constant dense<0.000000e+00> : vector<8x8xf32>
    %53 = tpu.matmul %52, %38, %cst_15 {dimension_numbers = #tpu.dot_dimension_numbers<[1], [0], [0], [1], [0, 0, 1, 1], [], []>} : vector<8x8xbf16>, vector<8x8xbf16>, vector<8x8xf32> -> vector<8x8xf32>
    %54 = arith.truncf %53 : vector<8x8xf32> to vector<8x8xbf16>
    %55 = vector.extract_strided_slice %8 {offsets = [0, 16], sizes = [8, 8], strides = [1, 1]} : vector<8x96xbf16> to vector<8x8xbf16>
    %56 = vector.extract_strided_slice %8 {offsets = [0, 48], sizes = [8, 8], strides = [1, 1]} : vector<8x96xbf16> to vector<8x8xbf16>
    %57 = vector.extract_strided_slice %8 {offsets = [0, 80], sizes = [8, 8], strides = [1, 1]} : vector<8x96xbf16> to vector<8x8xbf16>
    %cst_16 = arith.constant dense<0.000000e+00> : vector<8x8xf32>
    %58 = tpu.matmul %55, %56, %cst_16 {dimension_numbers = #tpu.dot_dimension_numbers<[1], [1], [0], [0], [0, 0, 1, 0], [], []>} : vector<8x8xbf16>, vector<8x8xbf16>, vector<8x8xf32> -> vector<8x8xf32>
    %59 = vector.broadcast %16 : vector<1x8xf32> to vector<8x8xf32>
    %60 = arith.addf %58, %59 : vector<8x8xf32>
    %cst_17 = arith.constant dense<0xFF800000> : vector<8xf32>
    %61 = vector.multi_reduction <maximumf>, %60, %cst_17 [1] : vector<8x8xf32> to vector<8xf32>
    %62 = vector.shape_cast %61 : vector<8xf32> to vector<8x1xf32>
    %63 = vector.broadcast %62 : vector<8x1xf32> to vector<8x8xf32>
    %64 = arith.subf %60, %63 : vector<8x8xf32>
    %65 = math.exp %64 : vector<8x8xf32>
    %cst_18 = arith.constant dense<0.000000e+00> : vector<8xf32>
    %66 = vector.multi_reduction <add>, %65, %cst_18 [1] : vector<8x8xf32> to vector<8xf32>
    %67 = vector.shape_cast %66 : vector<8xf32> to vector<8x1xf32>
    %68 = tpu.reciprocal %67 {approx = true} : vector<8x1xf32> -> vector<8x1xf32>
    %69 = vector.broadcast %68 : vector<8x1xf32> to vector<8x8xf32>
    %70 = arith.mulf %65, %69 : vector<8x8xf32>
    %71 = arith.truncf %70 : vector<8x8xf32> to vector<8x8xbf16>
    %cst_19 = arith.constant dense<0.000000e+00> : vector<8x8xf32>
    %72 = tpu.matmul %71, %57, %cst_19 {dimension_numbers = #tpu.dot_dimension_numbers<[1], [0], [0], [1], [0, 0, 1, 1], [], []>} : vector<8x8xbf16>, vector<8x8xbf16>, vector<8x8xf32> -> vector<8x8xf32>
    %73 = arith.truncf %72 : vector<8x8xf32> to vector<8x8xbf16>
    %74 = vector.extract_strided_slice %8 {offsets = [0, 24], sizes = [8, 8], strides = [1, 1]} : vector<8x96xbf16> to vector<8x8xbf16>
    %75 = vector.extract_strided_slice %8 {offsets = [0, 56], sizes = [8, 8], strides = [1, 1]} : vector<8x96xbf16> to vector<8x8xbf16>
    %76 = vector.extract_strided_slice %8 {offsets = [0, 88], sizes = [8, 8], strides = [1, 1]} : vector<8x96xbf16> to vector<8x8xbf16>
    %cst_20 = arith.constant dense<0.000000e+00> : vector<8x8xf32>
    %77 = tpu.matmul %74, %75, %cst_20 {dimension_numbers = #tpu.dot_dimension_numbers<[1], [1], [0], [0], [0, 0, 1, 0], [], []>} : vector<8x8xbf16>, vector<8x8xbf16>, vector<8x8xf32> -> vector<8x8xf32>
    %78 = vector.broadcast %16 : vector<1x8xf32> to vector<8x8xf32>
    %79 = arith.addf %77, %78 : vector<8x8xf32>
    %cst_21 = arith.constant dense<0xFF800000> : vector<8xf32>
    %80 = vector.multi_reduction <maximumf>, %79, %cst_21 [1] : vector<8x8xf32> to vector<8xf32>
    %81 = vector.shape_cast %80 : vector<8xf32> to vector<8x1xf32>
    %82 = vector.broadcast %81 : vector<8x1xf32> to vector<8x8xf32>
    %83 = arith.subf %79, %82 : vector<8x8xf32>
    %84 = math.exp %83 : vector<8x8xf32>
    %cst_22 = arith.constant dense<0.000000e+00> : vector<8xf32>
    %85 = vector.multi_reduction <add>, %84, %cst_22 [1] : vector<8x8xf32> to vector<8xf32>
    %86 = vector.shape_cast %85 : vector<8xf32> to vector<8x1xf32>
    %87 = tpu.reciprocal %86 {approx = true} : vector<8x1xf32> -> vector<8x1xf32>
    %88 = vector.broadcast %87 : vector<8x1xf32> to vector<8x8xf32>
    %89 = arith.mulf %84, %88 : vector<8x8xf32>
    %90 = arith.truncf %89 : vector<8x8xf32> to vector<8x8xbf16>
    %cst_23 = arith.constant dense<0.000000e+00> : vector<8x8xf32>
    %91 = tpu.matmul %90, %76, %cst_23 {dimension_numbers = #tpu.dot_dimension_numbers<[1], [0], [0], [1], [0, 0, 1, 1], [], []>} : vector<8x8xbf16>, vector<8x8xbf16>, vector<8x8xf32> -> vector<8x8xf32>
    %92 = arith.truncf %91 : vector<8x8xf32> to vector<8x8xbf16>
    %93 = tpu.concatenate %35, %54, %73, %92 in 1 : vector<8x8xbf16>, vector<8x8xbf16>, vector<8x8xbf16>, vector<8x8xbf16> -> vector<8x32xbf16>
    %c0_24 = arith.constant 0 : index
    %c0_25 = arith.constant 0 : index
    %94 = vector.load %arg5[%c0_24, %c0_25] : memref<32x32xbf16, #tpu.memory_space<vmem>>, vector<32x32xbf16>
    %cst_26 = arith.constant dense<0.000000e+00> : vector<8x32xf32>
    %95 = tpu.matmul %93, %94, %cst_26 {dimension_numbers = #tpu.dot_dimension_numbers<[1], [0], [0], [1], [0, 0, 1, 1], [], []>} : vector<8x32xbf16>, vector<32x32xbf16>, vector<8x32xf32> -> vector<8x32xf32>
    %c0_27 = arith.constant 0 : index
    %c0_28 = arith.constant 0 : index
    %96 = vector.load %arg6[%c0_27, %c0_28] : memref<1x32xf32, #tpu.memory_space<vmem>>, vector<1x32xf32>
    %97 = vector.broadcast %96 : vector<1x32xf32> to vector<8x32xf32>
    %98 = arith.addf %95, %97 : vector<8x32xf32>
    %99 = arith.addf %1, %98 : vector<8x32xf32>
    %cst_29 = arith.constant dense<0.000000e+00> : vector<8xf32>
    %100 = vector.multi_reduction <add>, %99, %cst_29 [1] : vector<8x32xf32> to vector<8xf32>
    %101 = vector.shape_cast %100 : vector<8xf32> to vector<8x1xf32>
    %cst_30 = arith.constant 3.200000e+01 : f32
    %102 = vector.broadcast %cst_30 : f32 to vector<8x1xf32>
    %103 = arith.divf %101, %102 : vector<8x1xf32>
    %104 = vector.broadcast %103 : vector<8x1xf32> to vector<8x32xf32>
    %105 = arith.subf %99, %104 : vector<8x32xf32>
    %106 = arith.mulf %105, %105 : vector<8x32xf32>
    %cst_31 = arith.constant dense<0.000000e+00> : vector<8xf32>
    %107 = vector.multi_reduction <add>, %106, %cst_31 [1] : vector<8x32xf32> to vector<8xf32>
    %108 = vector.shape_cast %107 : vector<8xf32> to vector<8x1xf32>
    %cst_32 = arith.constant 3.200000e+01 : f32
    %109 = vector.broadcast %cst_32 : f32 to vector<8x1xf32>
    %110 = arith.divf %108, %109 : vector<8x1xf32>
    %111 = vector.broadcast %103 : vector<8x1xf32> to vector<8x32xf32>
    %112 = arith.subf %99, %111 : vector<8x32xf32>
    %cst_33 = arith.constant 9.99999997E-7 : f32
    %113 = vector.broadcast %cst_33 : f32 to vector<8x1xf32>
    %114 = arith.addf %110, %113 : vector<8x1xf32>
    %115 = math.rsqrt %114 : vector<8x1xf32>
    %116 = vector.broadcast %115 : vector<8x1xf32> to vector<8x32xf32>
    %117 = arith.mulf %112, %116 : vector<8x32xf32>
    %c0_34 = arith.constant 0 : index
    %c0_35 = arith.constant 0 : index
    %118 = vector.load %arg7[%c0_34, %c0_35] : memref<1x32xf32, #tpu.memory_space<vmem>>, vector<1x32xf32>
    %119 = vector.broadcast %118 : vector<1x32xf32> to vector<8x32xf32>
    %120 = arith.mulf %117, %119 : vector<8x32xf32>
    %c0_36 = arith.constant 0 : index
    %c0_37 = arith.constant 0 : index
    %121 = vector.load %arg8[%c0_36, %c0_37] : memref<1x32xf32, #tpu.memory_space<vmem>>, vector<1x32xf32>
    %122 = vector.broadcast %121 : vector<1x32xf32> to vector<8x32xf32>
    %123 = arith.addf %120, %122 : vector<8x32xf32>
    %124 = arith.truncf %123 : vector<8x32xf32> to vector<8x32xbf16>
    %c0_38 = arith.constant 0 : index
    %c0_39 = arith.constant 0 : index
    %125 = vector.load %arg9[%c0_38, %c0_39] : memref<32x64xbf16, #tpu.memory_space<vmem>>, vector<32x64xbf16>
    %cst_40 = arith.constant dense<0.000000e+00> : vector<8x64xf32>
    %126 = tpu.matmul %124, %125, %cst_40 {dimension_numbers = #tpu.dot_dimension_numbers<[1], [0], [0], [1], [0, 0, 1, 1], [], []>} : vector<8x32xbf16>, vector<32x64xbf16>, vector<8x64xf32> -> vector<8x64xf32>
    %c0_41 = arith.constant 0 : index
    %c0_42 = arith.constant 0 : index
    %127 = vector.load %arg10[%c0_41, %c0_42] : memref<1x64xf32, #tpu.memory_space<vmem>>, vector<1x64xf32>
    %128 = vector.broadcast %127 : vector<1x64xf32> to vector<8x64xf32>
    %129 = arith.addf %126, %128 : vector<8x64xf32>
    %cst_43 = arith.constant 0.000000e+00 : f32
    %130 = vector.broadcast %cst_43 : f32 to vector<8x64xf32>
    %131 = arith.maximumf %129, %130 : vector<8x64xf32>
    %132 = arith.truncf %131 : vector<8x64xf32> to vector<8x64xbf16>
    %c0_44 = arith.constant 0 : index
    %c0_45 = arith.constant 0 : index
    %133 = vector.load %arg11[%c0_44, %c0_45] : memref<64x32xbf16, #tpu.memory_space<vmem>>, vector<64x32xbf16>
    %cst_46 = arith.constant dense<0.000000e+00> : vector<8x32xf32>
    %134 = tpu.matmul %132, %133, %cst_46 {dimension_numbers = #tpu.dot_dimension_numbers<[1], [0], [0], [1], [0, 0, 1, 1], [], []>} : vector<8x64xbf16>, vector<64x32xbf16>, vector<8x32xf32> -> vector<8x32xf32>
    %c0_47 = arith.constant 0 : index
    %c0_48 = arith.constant 0 : index
    %135 = vector.load %arg12[%c0_47, %c0_48] : memref<1x32xf32, #tpu.memory_space<vmem>>, vector<1x32xf32>
    %136 = vector.broadcast %135 : vector<1x32xf32> to vector<8x32xf32>
    %137 = arith.addf %134, %136 : vector<8x32xf32>
    %138 = arith.addf %123, %137 : vector<8x32xf32>
    %cst_49 = arith.constant dense<0.000000e+00> : vector<8xf32>
    %139 = vector.multi_reduction <add>, %138, %cst_49 [1] : vector<8x32xf32> to vector<8xf32>
    %140 = vector.shape_cast %139 : vector<8xf32> to vector<8x1xf32>
    %cst_50 = arith.constant 3.200000e+01 : f32
    %141 = vector.broadcast %cst_50 : f32 to vector<8x1xf32>
    %142 = arith.divf %140, %141 : vector<8x1xf32>
    %143 = vector.broadcast %142 : vector<8x1xf32> to vector<8x32xf32>
    %144 = arith.subf %138, %143 : vector<8x32xf32>
    %145 = arith.mulf %144, %144 : vector<8x32xf32>
    %cst_51 = arith.constant dense<0.000000e+00> : vector<8xf32>
    %146 = vector.multi_reduction <add>, %145, %cst_51 [1] : vector<8x32xf32> to vector<8xf32>
    %147 = vector.shape_cast %146 : vector<8xf32> to vector<8x1xf32>
    %cst_52 = arith.constant 3.200000e+01 : f32
    %148 = vector.broadcast %cst_52 : f32 to vector<8x1xf32>
    %149 = arith.divf %147, %148 : vector<8x1xf32>
    %150 = vector.broadcast %142 : vector<8x1xf32> to vector<8x32xf32>
    %151 = arith.subf %138, %150 : vector<8x32xf32>
    %cst_53 = arith.constant 9.99999997E-7 : f32
    %152 = vector.broadcast %cst_53 : f32 to vector<8x1xf32>
    %153 = arith.addf %149, %152 : vector<8x1xf32>
    %154 = math.rsqrt %153 : vector<8x1xf32>
    %155 = vector.broadcast %154 : vector<8x1xf32> to vector<8x32xf32>
    %156 = arith.mulf %151, %155 : vector<8x32xf32>
    %c0_54 = arith.constant 0 : index
    %c0_55 = arith.constant 0 : index
    %157 = vector.load %arg13[%c0_54, %c0_55] : memref<1x32xf32, #tpu.memory_space<vmem>>, vector<1x32xf32>
    %158 = vector.broadcast %157 : vector<1x32xf32> to vector<8x32xf32>
    %159 = arith.mulf %156, %158 : vector<8x32xf32>
    %c0_56 = arith.constant 0 : index
    %c0_57 = arith.constant 0 : index
    %160 = vector.load %arg14[%c0_56, %c0_57] : memref<1x32xf32, #tpu.memory_space<vmem>>, vector<1x32xf32>
    %161 = vector.broadcast %160 : vector<1x32xf32> to vector<8x32xf32>
    %162 = arith.addf %159, %161 : vector<8x32xf32>
    %163 = vector.shape_cast %162 : vector<8x32xf32> to vector<1x8x32xf32>
    %c0_58 = arith.constant 0 : index
    %c0_59 = arith.constant 0 : index
    %c0_60 = arith.constant 0 : index
    %164 = vector.load %arg15[%c0_58, %c0_59, %c0_60] : memref<1x8x32xf32, #tpu.memory_space<vmem>>, vector<1x8x32xf32>
    tpu.vector_store %arg15[%c0_58, %c0_59, %c0_60], %163 {strides = array<i32>} : memref<1x8x32xf32, #tpu.memory_space<vmem>>, vector<1x8x32xf32>,
    return
  }
  func.func @transform_0(%arg0: i32, %arg1: memref<2xi32, #tpu.memory_space<smem>>) -> (i32, i32, i32) {
    %c0_i32 = arith.constant 0 : i32
    %c0_i32_0 = arith.constant 0 : i32
    %c0_i32_1 = arith.constant 0 : i32
    return %arg0, %c0_i32, %c0_i32_0 : i32, i32, i32
  }
  func.func @transform_1(%arg0: i32, %arg1: memref<2xi32, #tpu.memory_space<smem>>) -> (i32, i32) {
    %c0_i32 = arith.constant 0 : i32
    %c0_i32_0 = arith.constant 0 : i32
    %c0_i32_1 = arith.constant 0 : i32
    return %c0_i32, %c0_i32_0 : i32, i32
  }
  func.func @transform_2(%arg0: i32, %arg1: memref<2xi32, #tpu.memory_space<smem>>) -> (i32, i32) {
    %c0_i32 = arith.constant 0 : i32
    %c0_i32_0 = arith.constant 0 : i32
    %c0_i32_1 = arith.constant 0 : i32
    return %c0_i32, %c0_i32_0 : i32, i32
  }
  func.func @transform_3(%arg0: i32, %arg1: memref<2xi32, #tpu.memory_space<smem>>) -> (i32, i32) {
    %c0_i32 = arith.constant 0 : i32
    %c0_i32_0 = arith.constant 0 : i32
    %c0_i32_1 = arith.constant 0 : i32
    return %c0_i32, %c0_i32_0 : i32, i32
  }
  func.func @transform_4(%arg0: i32, %arg1: memref<2xi32, #tpu.memory_space<smem>>) -> (i32, i32) {
    %c0_i32 = arith.constant 0 : i32
    %c0_i32_0 = arith.constant 0 : i32
    %c0_i32_1 = arith.constant 0 : i32
    return %c0_i32, %c0_i32_0 : i32, i32
  }
  func.func @transform_5(%arg0: i32, %arg1: memref<2xi32, #tpu.memory_space<smem>>) -> (i32, i32) {
    %c0_i32 = arith.constant 0 : i32
    %c0_i32_0 = arith.constant 0 : i32
    %c0_i32_1 = arith.constant 0 : i32
    return %c0_i32, %c0_i32_0 : i32, i32
  }
  func.func @transform_6(%arg0: i32, %arg1: memref<2xi32, #tpu.memory_space<smem>>) -> (i32, i32) {
    %c0_i32 = arith.constant 0 : i32
    %c0_i32_0 = arith.constant 0 : i32
    %c0_i32_1 = arith.constant 0 : i32
    return %c0_i32, %c0_i32_0 : i32, i32
  }
  func.func @transform_7(%arg0: i32, %arg1: memref<2xi32, #tpu.memory_space<smem>>) -> (i32, i32) {
    %c0_i32 = arith.constant 0 : i32
    %c0_i32_0 = arith.constant 0 : i32
    %c0_i32_1 = arith.constant 0 : i32
    return %c0_i32, %c0_i32_0 : i32, i32
  }
  func.func @transform_8(%arg0: i32, %arg1: memref<2xi32, #tpu.memory_space<smem>>) -> (i32, i32) {
    %c0_i32 = arith.constant 0 : i32
    %c0_i32_0 = arith.constant 0 : i32
    %c0_i32_1 = arith.constant 0 : i32
    return %c0_i32, %c0_i32_0 : i32, i32
  }
  func.func @transform_9(%arg0: i32, %arg1: memref<2xi32, #tpu.memory_space<smem>>) -> (i32, i32) {
    %c0_i32 = arith.constant 0 : i32
    %c0_i32_0 = arith.constant 0 : i32
    %c0_i32_1 = arith.constant 0 : i32
    return %c0_i32, %c0_i32_0 : i32, i32
  }
  func.func @transform_10(%arg0: i32, %arg1: memref<2xi32, #tpu.memory_space<smem>>) -> (i32, i32) {
    %c0_i32 = arith.constant 0 : i32
    %c0_i32_0 = arith.constant 0 : i32
    %c0_i32_1 = arith.constant 0 : i32
    return %c0_i32, %c0_i32_0 : i32, i32
  }
  func.func @transform_11(%arg0: i32, %arg1: memref<2xi32, #tpu.memory_space<smem>>) -> (i32, i32) {
    %c0_i32 = arith.constant 0 : i32
    %c0_i32_0 = arith.constant 0 : i32
    %c0_i32_1 = arith.constant 0 : i32
    return %c0_i32, %c0_i32_0 : i32, i32
  }
  func.func @transform_12(%arg0: i32, %arg1: memref<2xi32, #tpu.memory_space<smem>>) -> (i32, i32) {
    %c0_i32 = arith.constant 0 : i32
    %c0_i32_0 = arith.constant 0 : i32
    %c0_i32_1 = arith.constant 0 : i32
    return %c0_i32, %c0_i32_0 : i32, i32
  }
  func.func @transform_13(%arg0: i32, %arg1: memref<2xi32, #tpu.memory_space<smem>>) -> (i32, i32, i32) {
    %c0_i32 = arith.constant 0 : i32
    %c0_i32_0 = arith.constant 0 : i32
    %c0_i32_1 = arith.constant 0 : i32
    return %arg0, %c0_i32, %c0_i32_0 : i32, i32, i32
  }
}

</mosaic_0001>

<bundles_post_ra>
// kernel: tpu_custom_call.1
= control target key start
LH: loop header
LB: loop body
LE: loop exit
PB: predicated region body
PF: predicated region fallthrough
CT: control target
= control target key end

     0   :  { %s1337_s16 = smov [#allocation3]   ;;  %s1630_s0 = inlined_call_operand.hbm [shape: s32[2], index: 0, kind: input, shape index: {}]   ;;  %s1631_s1 = inlined_call_operand.vmem [shape: f32[2,8,32], index: 1, kind: input, shape index: {}]   ;;  %s1632_s2 = inlined_call_operand.vmem [shape: bf16[32,96], index: 2, kind: input, shape index: {}]   ;;  %s1633_s3 = inlined_call_operand.vmem [shape: f32[1,96], index: 3, kind: input, shape index: {}]   ;;  %s1634_s4 = inlined_call_operand.vmem [shape: bf16[32,32], index: 4, kind: input, shape index: {}]   ;;  %s1635_s5 = inlined_call_operand.vmem [shape: f32[1,32], index: 5, kind: input, shape index: {}]   ;;  %s1636_s6 = inlined_call_operand.vmem [shape: f32[1,32], index: 6, kind: input, shape index: {}]   ;;  %s1637_s7 = inlined_call_operand.vmem [shape: f32[1,32], index: 7, kind: input, shape index: {}]   ;;  %s1638_s8 = inlined_call_operand.hbm [shape: bf16[32,64], index: 8, kind: input, shape index: {}]   ;;  %s1639_s9 = inlined_call_operand.vmem [shape: f32[1,64], index: 9, kind: input, shape index: {}]   ;;  %s1640_s10 = inlined_call_operand.vmem [shape: bf16[64,32], index: 10, kind: input, shape index: {}]   ;;  %s1641_s11 = inlined_call_operand.vmem [shape: f32[1,32], index: 11, kind: input, shape index: {}]   ;;  %s1642_s12 = inlined_call_operand.vmem [shape: f32[1,32], index: 12, kind: input, shape index: {}]   ;;  %s1643_s13 = inlined_call_operand.vmem [shape: f32[1,32], index: 13, kind: input, shape index: {}]   ;;  %s1644_s14 = inlined_call_operand.hbm [shape: f32[2,8,32], index: 14, kind: output, shape index: {}]  }
   0x1   :  { %1646 = sst [smem:[#allocation13_spill]] %s1631_s1  ;;  %s20_s15 = sshll.u32 %s1630_s0, 4  ;;  %s21_s15 = int_to_ptr.hbm [resolvable:$true] %s20_s15 }
   0x2   :  { %1647 = sst [smem:[#allocation14_spill]] %s1638_s8 }
   0x3   :  { %23 = dma.hbm_to_smem %s21_s15, 16, %s1337_s16, [#allocation2] }
   0x4   :  { %1311 = dma.done.wait [#allocation2], 16 }
   0x5   :  { %1312 = vsyncadd [#allocation2], 4294967280 }
   0x6   :  { %26 = sfence }
   0x7   :  { %27 = vsyncpa [#allocation5], 0 }
   0x8   :  { %28 = vsyncpa [#allocation6], 0 }
   0x9   :  { %30 = vsyncpa [#allocation6 + $0x1], 0  ;;  %s1435_s17 = smov 0   ;;  %s1437_s18 = smov 0  }
   0xa   :  { %s1439_s19 = smov 0   ;;  %s1441_s20 = smov 0  }
   0xb LB: > { %1648 = sst [smem:[#allocation11_spill]] %s1331_s19  ;;  %s1456_s0 = sadd.s32 4294967295, %s1335_s20   ;;  %s1335_s20 = sphi %s1441_s20, %s1658_s20   ;;  %s1331_s19 = sphi %s1439_s19, %s1655_s19   ;;  %s1327_s18 = sphi %s1437_s18, %s1657_s18   ;;  %s1323_s17 = sphi %s1435_s17, %s1656_s17  }
   0xc   : > { %s1052_s21 = sadd.s32 4294967294, %s1335_s20   ;;  %s1460_s22 = sadd.s32 1, %s1335_s20  }
   0xd   : > { %s321_s23 = sadd.s32 1, %s1331_s19  ;;  %s318_s24 = ssub.s32 %s1335_s20, %s1460_s22 }
   0xe   : > { %p331_p0 = scmp.ne.s32.totalorder %s1331_s19, %s1327_s18  ;;  %p319_p1 = scmp.eq.s32.totalorder %s318_s24, 0 }
   0xf   : > { %p332_p2 = scmp.eq.s32.totalorder %s1456_s0, 1  ;;  %p337_p3 = scmp.ne.s32.totalorder %s1327_s18, %s1323_s17 }
  0x10   : > { %p338_p4 = scmp.eq.s32.totalorder %s1052_s21, 1  ;;  %p1053_p7 = scmp.ge.s32.totalorder %s1335_s20, 1 }
  0x11   : > { %s1471_s25 = scalar_select %p319_p1, %s1331_s19, %s321_s23  }
  0x12   : > { %p1473_p5 = por %p332_p2, %p331_p0  ;;  %p1477_p6 = por %p338_p4, %p337_p3 }
  0x13   : > { %1649 = sst [smem:[#allocation12_spill]] %s1471_s25  ;;  %p345_p8 = scmp.lt.s32.totalorder %s1335_s20, 3 }
  0x14   : > { %p1140_p9 = scmp.eq.s32.totalorder %s1456_s0, 0  ;;  %s1652_s8 = sld [smem:[#allocation14_spill]] }
  0x15   : > { %p346_p10 = pnand %p1053_p7, %p345_p8  ;;  %s1338_s15 = smov [#allocation4]  }
  0x16   : > { %s376_s16 = sshll.u32 %s1338_s15, 4  ;;  %s1339_s21 = smov 64   ;;  %s377_s16 = int_to_ptr.vmem [resolvable:$true] %s376_s16 }
  0x17   : > { %p1132_p11 = pneg %p346_p10  ;;  %s1340_s23 = smov 4  }
  0x18   : > { %414 = sbr.rel (%p346_p10) target bundleno = 1921 (0x781), region = 72 }
  0x19   : > { %p1133_p12 = pnand %p1140_p9, %p1132_p11 }
  0x1a   : > { %s374_s30 = sshll.u32 %s1652_s8, 4  ;;  %s375_s30 = int_to_ptr.hbm [resolvable:$true] %s374_s30 }
  0x1b   : > { %1135 = dma.hbm_to_vmem [thread:$0]  (!%p1133_p12), %s375_s30, 256, %s377_s16, [#allocation5], %s1339_s21, %s1339_s21, %s1340_s23  }
  0x1d   : > { %1314 = dma.done.wait (%p1140_p9), [#allocation5], 256  }
  0x1e   : > { %1316 = vsyncadd (%p1140_p9), [#allocation5], 4294967040  ;;  %p458_p13 = scmp.lt.s32.totalorder %s1456_s0, 1  ;;  %s1653_s1 = sld [smem:[#allocation13_spill]]  ;;  %v1117_v0 = vld [vmem:[%s1632_s2 + $0x8] sm:$0xff]  ;;  %v1116_v1 = vld [vmem:[%s1632_s2] sm:$0xff]  ;;  %v503_v22 = vlaneseq }
  0x1f   : > { %495 = vmatpush.bf16.msra.mxu0 %v1117_v0  ;;  %vm485_vm0 = vcmask 261120   ;;  %v1195_v4 = vld [vmem:[%s1633_s3] ss:$0 sm:$0xff]  ;;  %s1342_s19 = smov 120   ;;  %s1343_s25 = smov 96   ;;  %vm514_vm1 = vcmask 64512  }
  0x20   : > { %s459_s24 = scalar_select %p458_p13, %s1456_s0, 1  ;;  %v504_v23 = vand.u32 127, %v503_v22  ;;  %v1348_v25 = vmov -1e+09   ;;  %vm551_vm3 = vcmask 1043456   ;;  %vm758_vm4 = vcmask 130048  }
  0x21   : > { %s1346_s29 = smov 88   ;;  %s1347_s15 = smov 112   ;;  %vm761_vm5 = vcmask 195584   ;;  %vm914_vm10 = vcmask 523264  }
  0x22   : > { %s1059_s28 = sshll.u32 %s459_s24, 3  ;;  %s1344_s24 = smov 80  }
  0x23   : > { %496 = vmatpush.bf16.msra.mxu0 %v1116_v1  ;;  %s505_s30 = sld [smem:[#allocation3 + %s1456_s0]]  ;;  %s1349_s16 = smov 64  }
  0x24   : > { %s461_s8 = scalar_lea.vmem %s1653_s1, %s1059_s28  ;;  %s1345_s28 = smov 72  }
  0x25   : > { %v1504_v2 = vld [vmem:[%s461_s8] sm:$0xff]  ;;  %s1341_s8 = smov 104   ;;  %s1350_s21 = smov 40  }
  0x26   : > { %v464_v3 = vpack.c.bf16 %v1504_v2, %v1504_v2  ;;  %s1351_s23 = smov 56  }
  0x28   : > { %1068 = vmatmul.msk.bf16.vlgmr.msra.gmra.mxu0 %vm485_vm0, %v464_v3 }
  0x29   : > { %v506_v24 = vstv %s505_s30 }
  0x2a   : > { %vm507_vm2 = vcmp.lt.s32.totalorder %v504_v23, %v506_v24 }
  0x2b   : > { %v508_v26 = vsel %vm507_vm2, 0.0, %v1348_v25 }
  0xa5   : > { %v498_v5 = vpop.f32.mrf.mxu0 }
  0xa6   : > { %v499_v6 = vadd.f32 %v1195_v4, %v498_v5 }
  0xa8   : > { %v502_v7 = vpack.c.bf16 %v499_v6, %v499_v6 }
  0xaa   : > { %v510_v8 = vunpack.c.l.b16 %v502_v7 }
  0xac   : > { %v1512_v9 = vpack.c.b16 %v510_v8, %v510_v8 }
  0xad   : > { %v500_v10 = vpop.f32.mrf.mxu0 }
  0xae   : > { %683 = vrot.lane.b32.xlu2 %v1512_v9, %s1341_s8  ;;  %569 = vrot.lane.b32.xlu1 %v1512_v9, %s1342_s19  ;;  %s1352_s8 = smov 48   ;;  %s1353_s19 = smov 8  }
  0xaf   : > { %512 = vrot.lane.b32.xlu0 %v1512_v9, %s1343_s25  ;;  %s1354_s25 = smov 16  }
  0xb6   : > { %628 = vrot.lane.b32.xlu2 %v1512_v9, %s1344_s24  ;;  %685 = vrot.lane.b32.xlu1 %v1512_v9, %s1345_s28  ;;  %s1355_s24 = smov 24   ;;  %s455_s28 = sand.u32 1, %s1327_s18  }
  0xb7   : > { %571 = vrot.lane.b32.xlu0 %v1512_v9, %s1346_s29  ;;  %s1058_s29 = sshll.u32 %s455_s28, 3  ;;  %s966_s30 = scalar_lea.sflag [#allocation6], %s455_s28 }
  0xbf   : > { %626 = vrot.lane.b32.xlu0 %v1512_v9, %s1347_s15  ;;  %s1113_s15 = sshll.u32 %s1456_s0, 3 }
 0x108   : > { %v684_v11 = vpop.permute.xlu2 %683 }
 0x110   : > { %v629_v12 = vpop.permute.xlu2 %628 }
 0x111   : > { %v634_v13 = vsel %vm514_vm1, %v629_v12, 0 }
 0x112   : > { %643 = vmatpush.bf16.xpose.msrb.mxu0 %v634_v13 }
 0x120   : > { %v570_v14 = vpop.permute.xlu1 %569 }
 0x121   : > { %v513_v15 = vpop.permute.xlu0 %512 }
 0x122   : > { %v519_v16 = vsel %vm514_vm1, %v513_v15, 0 }
 0x123   : > { %528 = vmatpush.bf16.xpose.msra.mxu1 %v519_v16 }
 0x128   : > { %v686_v17 = vpop.permute.xlu1 %685 }
 0x129   : > { %v572_v18 = vpop.permute.xlu0 %571  ;;  %v691_v19 = vsel %vm514_vm1, %v686_v17, 0 }
 0x12a   : > { %1069 = vmatmul.msk.bf16.vlgmr.msra.gmra.mxu1 %vm514_vm1, %v502_v7  ;;  %v577_v20 = vsel %vm514_vm1, %v572_v18, 0 }
 0x12b   : > { %586 = vmatpush.bf16.xpose.msra.mxu3 %v577_v20 }
 0x131   : > { %v627_v21 = vpop.permute.xlu0 %626 }
 0x132   : > { %1071 = vmatmul.msk.bf16.vlgmr.msra.gmra.mxu3 %vm514_vm1, %v570_v14  ;;  %1073 = vmatmul.msk.bf16.vlgmr.msrb.gmra.mxu0 %vm514_vm1, %v627_v21 }
 0x133   : > { %700 = vmatpush.bf16.xpose.msrb.mxu3 %v691_v19 }
 0x142   : > { %1075 = vmatmul.msk.bf16.vlgmr.msrb.gmra.mxu3 %vm514_vm1, %v684_v11 }
 0x1a7   : > { %v530_v27 = vpop.f32.mrf.mxu1 }
 0x1a8   : > { %v531_v28 = vadd.f32 %v530_v27, %v508_v26 }
 0x1aa   : > { %v534_v29 = vsel %vm514_vm1, %v531_v28, -inf }
 0x1ab   : > { %535 = vmax.xlane.f32.xlu1 %v534_v29 }
 0x1af   : > { %v532_v30 = vpop.f32.mrf.mxu1  ;;  %v645_v31 = vpop.f32.mrf.mxu0 }
 0x1b0   : > { %v646_v36 = vadd.f32 %v645_v31, %v508_v26 }
 0x1b2   : > { %v649_v38 = vsel %vm514_vm1, %v646_v36, -inf }
 0x1b5   : > { %v588_v32 = vpop.f32.mrf.mxu3 }
 0x1b6   : > { %v589_v33 = vadd.f32 %v588_v32, %v508_v26 }
 0x1b7   : > { %v647_v34 = vpop.f32.mrf.mxu0 }
 0x1b8   : > { %v592_v35 = vsel %vm514_vm1, %v589_v33, -inf }
 0x1b9   : > { %593 = vmax.xlane.f32.xlu2 %v592_v35 }
 0x1bd   : > { %v590_v37 = vpop.f32.mrf.mxu3 }
 0x1c1   : > { %650 = vmax.xlane.f32.xlu2 %v649_v38 }
 0x1c5   : > { %v702_v39 = vpop.f32.mrf.mxu3 }
 0x1c6   : > { %v703_v40 = vadd.f32 %v702_v39, %v508_v26 }
 0x1c8   : > { %v706_v41 = vsel %vm514_vm1, %v703_v40, -inf }
 0x1c9   : > { %707 = vmax.xlane.f32.xlu0 %v706_v41  ;;  %v1119_v41 = vld [vmem:[%s1634_s4 + $0x8] sm:$0xff] }
 0x1ca   : > { %792 = vmatpush.bf16.msra.mxu0 %v1119_v41 }
 0x1cd   : > { %v704_v42 = vpop.f32.mrf.mxu3 }
 0x1ce   : > { %v1118_v42 = vld [vmem:[%s1634_s4] sm:$0xff] }
 0x1cf   : > { %793 = vmatpush.bf16.msra.mxu0 %v1118_v42 }
 0x1d9   : > { %546 = vrot.lane.b32.xlu2 %v1512_v9, %s1349_s16 }
 0x1e1   : > { %718 = vrot.lane.b32.xlu2 %v1512_v9, %s1350_s21 }
 0x21e   : > { %v536_v43 = vpop.xlane.xlu1 %535 }
 0x21f   : > { %v537_v44 = vsub.f32 %v531_v28, %v536_v43 }
 0x221   : > { %v538_v45 = vmul.f32 1.442695, %v537_v44 }
 0x223   : > { %1203 = vpow2.f32 %v538_v45 }
 0x229   : > { %v1204_v46 = vpop.eup %1203 }
 0x22a   : > { %v540_v47 = vsel %vm514_vm1, %v1204_v46, 0.0 }
 0x22b   : > { %541 = vadd.xlane.f32.xlu1 %v540_v47 }
 0x22c   : > { %v594_v48 = vpop.xlane.xlu2 %593 }
 0x22d   : > { %v595_v51 = vsub.f32 %v589_v33, %v594_v48 }
 0x22f   : > { %v596_v53 = vmul.f32 1.442695, %v595_v51 }
 0x234   : > { %v651_v49 = vpop.xlane.xlu2 %650 }
 0x235   : > { %v652_v50 = vsub.f32 %v646_v36, %v651_v49 }
 0x237   : > { %v653_v52 = vmul.f32 1.442695, %v652_v50  ;;  %v1196_v50 = vld [vmem:[%s1635_s5] ss:$0 sm:$0xff] }
 0x239   : > { %1205 = vpow2.f32 %v653_v52 }
 0x23a   : > { %1207 = vpow2.f32 %v596_v53 }
 0x23c   : > { %v547_v54 = vpop.permute.xlu2 %546  ;;  %v708_v55 = vpop.xlane.xlu0 %707 }
 0x23d   : > { %v553_v56 = vsel %vm551_vm3, %v547_v54, 0  ;;  %v709_v58 = vsub.f32 %v703_v40, %v708_v55 }
 0x23e   : > { %562 = vmatpush.bf16.msra.mxu2 %v553_v56  ;;  %v1356_v56 = vmov 32.0  }
 0x23f   : > { %v1206_v57 = vpop.eup %1205  ;;  %v710_v60 = vmul.f32 1.442695, %v709_v58 }
 0x240   : > { %v655_v59 = vsel %vm514_vm1, %v1206_v57, 0.0  ;;  %v1208_v61 = vpop.eup %1207 }
 0x241   : > { %656 = vadd.xlane.f32.xlu0 %v655_v59  ;;  %1209 = vpow2.f32 %v710_v60  ;;  %v598_v62 = vsel %vm514_vm1, %v1208_v61, 0.0 }
 0x244   : > { %604 = vrot.lane.b32.xlu1 %v1512_v9, %s1351_s23  ;;  %v719_v7 = vpop.permute.xlu2 %718 }
 0x245   : > { %v724_v11 = vsel %vm551_vm3, %v719_v7, 0 }
 0x247   : > { %v1210_v63 = vpop.eup %1209 }
 0x248   : > { %v712_v0 = vsel %vm514_vm1, %v1210_v63, 0.0 }
 0x249   : > { %599 = vadd.xlane.f32.xlu0 %v598_v62 }
 0x251   : > { %713 = vadd.xlane.f32.xlu0 %v712_v0 }
 0x265   : > { %661 = vrot.lane.b32.xlu0 %v1512_v9, %s1352_s8  ;;  %s976_s8 = scalar_lea.hbm %s1644_s14, %s1113_s15 }
 0x266   : > { %s980_s1 = sshll.u32 %s976_s8, 4  ;;  %s981_s1 = int_to_ptr.hbm [resolvable:$true] %s980_s1 }
 0x267   : > { %s1281_s16 = sshra.s32 %s981_s1, 4  ;;  %s1282_s16 = int_to_ptr.hbm [resolvable:$true] %s1281_s16 }
 0x268   : > { %s1283_s15 = scalar_lea.hbm %s1282_s16, 8  ;;  %p1288_p3 = scmp.lt.s32.totalorder %s1282_s16, %s1644_s14 }
 0x269   : > { %p1284_p0 = scmp.ne.s32.totalorder %s1282_s16, %s1283_s15 }
 0x26b   : > { %p1285_p1 = pnand %p1284_p0, %p1473_p5 }
 0x26d   : > { %p1286_p2 = pneg %p1285_p1 }
 0x29e   : > { %v542_v1 = vpop.xlane.xlu1 %541 }
 0x29f   : > { %1211 = vrcp.f32 %v542_v1 }
 0x2a5   : > { %v1212_v3 = vpop.eup %1211 }
 0x2a6   : > { %v544_v4 = vmul.f32 %v1212_v3, %v1204_v46 }
 0x2a8   : > { %v545_v5 = vpack.c.bf16 %v544_v4, %v544_v4 }
 0x2aa   : > { %1070 = vmatmul.msk.bf16.vlgmr.msra.gmra.mxu2 %vm514_vm1, %v545_v5  ;;  %v1120_v5 = vld [vmem:[#allocation4] sm:$0xff] }
 0x2b4   : > { %v657_v6 = vpop.xlane.xlu0 %656 }
 0x2b6   : > { %v605_v8 = vpop.permute.xlu1 %604 }
 0x2b7   : > { %v610_v10 = vsel %vm551_vm3, %v605_v8, 0 }
 0x2b8   : > { %619 = vmatpush.bf16.msrb.mxu2 %v610_v10  ;;  %v1124_v10 = vld [vmem:[%s1640_s10 + $0x10] sm:$0xff] }
 0x2bc   : > { %733 = vmatpush.bf16.msra.mxu2 %v724_v11  ;;  %v600_v12 = vpop.xlane.xlu0 %599 }
 0x2bd   : > { %1213 = vrcp.f32 %v600_v12  ;;  %v1123_v12 = vld [vmem:[%s1640_s10 + $0x8] sm:$0xff] }
 0x2c3   : > { %v1214_v13 = vpop.eup %1213 }
 0x2c4   : > { %v602_v9 = vmul.f32 %v1214_v13, %v1208_v61  ;;  %v714_v14 = vpop.xlane.xlu0 %713 }
 0x2c5   : > { %1215 = vrcp.f32 %v714_v14 }
 0x2c6   : > { %v603_v15 = vpack.c.bf16 %v602_v9, %v602_v9  ;;  %1217 = vrcp.f32 %v657_v6  ;;  %v1125_v6 = vld [vmem:[%s1640_s10 + $0x18] sm:$0xff] }
 0x2c7   : > { %1219 = vrcp.f32 %v1356_v56  ;;  %922 = vmatpush.bf16.msra.mxu3 %v1125_v6 }
 0x2c8   : > { %1072 = vmatmul.msk.bf16.vlgmr.msrb.gmra.mxu2 %vm514_vm1, %v603_v15 }
 0x2cb   : > { %v1216_v16 = vpop.eup %1215  ;;  %923 = vmatpush.bf16.msra.mxu3 %v1124_v10 }
 0x2cc   : > { %v716_v17 = vmul.f32 %v1216_v16, %v1210_v63  ;;  %v1218_v18 = vpop.eup %1217 }
 0x2cd   : > { %v659_v19 = vmul.f32 %v1218_v18, %v1206_v57  ;;  %v1220_v57 = vpop.eup %1219  ;;  %v1197_v18 = vld [vmem:[%s1636_s6] ss:$0 sm:$0xff] }
 0x2ce   : > { %v717_v20 = vpack.c.bf16 %v716_v17, %v716_v17  ;;  %v804_v58 = vmul.f32 32.0, %v1220_v57  ;;  %vm808_vm6 = vweird.f32 %v1220_v57 }
 0x2cf   : > { %v660_v23 = vpack.c.bf16 %v659_v19, %v659_v19  ;;  %924 = vmatpush.bf16.msra.mxu3 %v1123_v12 }
 0x2d0   : > { %v805_v59 = vsub.f32 1.0, %v804_v58 }
 0x2d2   : > { %v806_v60 = vmul.f32 %v1220_v57, %v805_v59 }
 0x2d4   : > { %v807_v61 = vadd.f32 %v1220_v57, %v806_v60 }
 0x2d6   : > { %v809_v62 = vsel %vm808_vm6, %v1220_v57, %v807_v61 }
 0x2d7   : > { %v662_v21 = vpop.permute.xlu0 %661 }
 0x2d8   : > { %1076 = vmatmul.msk.bf16.vlgmr.msra.gmra.mxu2 %vm514_vm1, %v717_v20  ;;  %v667_v22 = vsel %vm551_vm3, %v662_v21, 0  ;;  %v1198_v20 = vld [vmem:[%s1637_s7] ss:$0 sm:$0xff] }
 0x2d9   : > { %676 = vmatpush.bf16.msrb.mxu1 %v667_v22 }
 0x2dc   : > { %1074 = vmatmul.msk.bf16.vlgmr.msrb.gmra.mxu1 %vm514_vm1, %v660_v23 }
 0x32d   : > { %v564_v24 = vpop.f32.mrf.mxu2 }
 0x32e   : > { %v568_v44 = vpack.c.bf16 %v564_v24, %v564_v24 }
 0x335   : > { %v566_v25 = vpop.f32.mrf.mxu2 }
 0x336   : > { %v1122_v25 = vld [vmem:[%s1640_s10] sm:$0xff] }
 0x337   : > { %925 = vmatpush.bf16.msra.mxu3 %v1122_v25 }
 0x34b   : > { %v621_v26 = vpop.f32.mrf.mxu2 }
 0x34c   : > { %v625_v27 = vpack.c.bf16 %v621_v26, %v621_v26  ;;  %v1199_v26 = vld [vmem:[%s1639_s9] ss:$0 sm:$0xff] }
 0x34e   : > { %v741_v28 = vunpack.c.l.b16 %v625_v27 }
 0x350   : > { %v742_v29 = vpack.c.b16 %v741_v28, %v741_v28 }
 0x352   : > { %743 = vrot.lane.b32.xlu1 %v742_v29, %s1353_s19 }
 0x353   : > { %v623_v30 = vpop.f32.mrf.mxu2 }
 0x359   : > { %v678_v31 = vpop.f32.mrf.mxu1 }
 0x35a   : > { %v682_v32 = vpack.c.bf16 %v678_v31, %v678_v31 }
 0x35b   : > { %v735_v33 = vpop.f32.mrf.mxu2 }
 0x35c   : > { %v746_v34 = vunpack.c.l.b16 %v682_v32  ;;  %v739_v35 = vpack.c.bf16 %v735_v33, %v735_v33  ;;  %v1200_v32 = vld [vmem:[%s1641_s11] ss:$0 sm:$0xff] }
 0x35e   : > { %v747_v36 = vpack.c.b16 %v746_v34, %v746_v34  ;;  %v751_v37 = vunpack.c.l.b16 %v739_v35 }
 0x360   : > { %v752_v38 = vpack.c.b16 %v751_v37, %v751_v37  ;;  %748 = vrot.lane.b32.xlu2 %v747_v36, %s1354_s25 }
 0x361   : > { %v680_v39 = vpop.f32.mrf.mxu1 }
 0x362   : > { %753 = vrot.lane.b32.xlu1 %v752_v38, %s1355_s24  ;;  %s457_s24 = scalar_lea.vmem [#allocation7], %s1058_s29  ;;  %s1287_s29 = scalar_lea.hbm %s1644_s14, 16 }
 0x363   : > { %v737_v40 = vpop.f32.mrf.mxu2  ;;  %s978_s0 = sshll.u32 %s457_s24, 4  ;;  %p1289_p4 = scmp.lt.s32.totalorder %s1287_s29, %s1283_s15  ;;  %s979_s0 = int_to_ptr.vmem [resolvable:$true] %s978_s0 }
 0x365   : > { %p1290_p7 = por %p1289_p4, %p1288_p3 }
 0x367   : > { %p1291_p8 = pnand %p1290_p7, %p1286_p2 }
 0x3ba   : > { %v749_v46 = vpop.permute.xlu2 %748 }
 0x3c4   : > { %v744_v43 = vpop.permute.xlu1 %743 }
 0x3c5   : > { %v757_v45 = vsel %vm514_vm1, %v568_v44, %v744_v43 }
 0x3c6   : > { %v760_v48 = vsel %vm758_vm4, %v757_v45, %v749_v46 }
 0x3d4   : > { %v754_v47 = vpop.permute.xlu1 %753 }
 0x3d5   : > { %v763_v49 = vsel %vm761_vm5, %v760_v48, %v754_v47 }
 0x3d6   : > { %1085 = vmatmul.msk.bf16.vlgmr.msra.gmra.mxu0 %vm485_vm0, %v763_v49 }
 0x453   : > { %v795_v51 = vpop.f32.mrf.mxu0 }
 0x454   : > { %v796_v52 = vadd.f32 %v1196_v50, %v795_v51 }
 0x456   : > { %v799_v53 = vadd.f32 %v796_v52, %v1504_v2  ;;  %v1121_v2 = vld [vmem:[#allocation4 + $0x8] sm:$0xff]  ;;  %v1201_v52 = vld [vmem:[%s1642_s12] ss:$0 sm:$0xff] }
 0x457   : > { %869 = vmatpush.bf16.msra.mxu1 %v1121_v2 }
 0x458   : > { %v800_v54 = vsel %vm485_vm0, %v799_v53, 0.0 }
 0x459   : > { %801 = vadd.xlane.f32.xlu2 %v800_v54 }
 0x45b   : > { %v797_v55 = vpop.f32.mrf.mxu0  ;;  %870 = vmatpush.bf16.msra.mxu1 %v1120_v5 }
 0x45c   : > { %v1202_v55 = vld [vmem:[%s1643_s13] ss:$0 sm:$0xff] }
 0x4cc   : > { %v802_v63 = vpop.xlane.xlu2 %801 }
 0x4cd   : > { %v810_v0 = vmul.f32 %v809_v62, %v802_v63 }
 0x4cf   : > { %v811_v1 = vsub.f32 %v799_v53, %v810_v0 }
 0x4d1   : > { %v812_v3 = vmul.f32 %v811_v1, %v811_v1 }
 0x4d3   : > { %v813_v4 = vsel %vm485_vm0, %v812_v3, 0.0 }
 0x4d4   : > { %814 = vadd.xlane.f32.xlu1 %v813_v4 }
 0x547   : > { %v815_v7 = vpop.xlane.xlu1 %814 }
 0x548   : > { %v816_v8 = vmul.f32 %v815_v7, %v809_v62 }
 0x54a   : > { %v817_v11 = vadd.f32 1e-06, %v816_v8 }
 0x54c   : > { %1221 = vrsqrt.f32 %v817_v11  ;;  %vm824_vm8 = vweird.f32 %v817_v11 }
 0x552   : > { %v1222_v13 = vpop.eup %1221 }
 0x553   : > { %v819_v9 = vmul.f32 %v1222_v13, %v817_v11  ;;  %vm825_vm7 = vweird.f32 %v1222_v13 }
 0x554   : > { %vm826_vm9 = vmor %vm824_vm8, %vm825_vm7 }
 0x555   : > { %v820_v14 = vmul.f32 %v1222_v13, %v819_v9 }
 0x557   : > { %v821_v15 = vmul.f32 0.5, %v820_v14 }
 0x559   : > { %v822_v16 = vsub.f32 1.5, %v821_v15 }
 0x55b   : > { %v823_v17 = vmul.f32 %v1222_v13, %v822_v16 }
 0x55d   : > { %v827_v19 = vsel %vm826_vm9, %v1222_v13, %v823_v17 }
 0x55e   : > { %v828_v21 = vmul.f32 %v827_v19, %v811_v1 }
 0x560   : > { %v833_v22 = vmul.f32 %v1197_v18, %v828_v21 }
 0x562   : > { %v838_v23 = vadd.f32 %v1198_v20, %v833_v22 }
 0x564   : > { %v839_v24 = vpack.c.bf16 %v838_v23, %v838_v23 }
 0x566   : > { %1094 = vmatmul.msk.bf16.vlgmr.msra.gmra.mxu1 %vm485_vm0, %v839_v24 }
 0x5e3   : > { %v872_v27 = vpop.f32.mrf.mxu1 }
 0x5e4   : > { %v873_v28 = vadd.f32 %v1199_v26, %v872_v27 }
 0x5e6   : > { %v876_v29 = vmax.f32 %v873_v28, 0.0 }
 0x5e8   : > { %v877_v30 = vpack.c.bf16 %v876_v29, %v876_v29 }
 0x5ea   : > { %1111 = vmatmul.msk.bf16.vlgmr.msra.gmra.mxu3 %vm914_vm10, %v877_v30 }
 0x5eb   : > { %v874_v31 = vpop.f32.mrf.mxu1 }
 0x66d   : > { %v927_v33 = vpop.f32.mrf.mxu3 }
 0x66e   : > { %v928_v34 = vadd.f32 %v1200_v32, %v927_v33 }
 0x670   : > { %v931_v35 = vadd.f32 %v928_v34, %v838_v23 }
 0x672   : > { %v932_v36 = vsel %vm485_vm0, %v931_v35, 0.0 }
 0x673   : > { %933 = vadd.xlane.f32.xlu0 %v932_v36 }
 0x675   : > { %v929_v37 = vpop.f32.mrf.mxu3 }
 0x6e6   : > { %v934_v38 = vpop.xlane.xlu0 %933 }
 0x6e7   : > { %v935_v39 = vmul.f32 %v934_v38, %v809_v62 }
 0x6e9   : > { %v936_v40 = vsub.f32 %v931_v35, %v935_v39 }
 0x6eb   : > { %v937_v41 = vmul.f32 %v936_v40, %v936_v40 }
 0x6ed   : > { %v938_v42 = vsel %vm485_vm0, %v937_v41, 0.0 }
 0x6ee   : > { %939 = vadd.xlane.f32.xlu2 %v938_v42 }
 0x761   : > { %v940_v43 = vpop.xlane.xlu2 %939 }
 0x762   : > { %v941_v44 = vmul.f32 %v940_v43, %v809_v62 }
 0x764   : > { %v942_v45 = vadd.f32 1e-06, %v941_v44 }
 0x766   : > { %1223 = vrsqrt.f32 %v942_v45  ;;  %vm949_vm12 = vweird.f32 %v942_v45 }
 0x76c   : > { %v1224_v46 = vpop.eup %1223 }
 0x76d   : > { %v944_v47 = vmul.f32 %v1224_v46, %v942_v45  ;;  %vm950_vm11 = vweird.f32 %v1224_v46 }
 0x76e   : > { %vm951_vm13 = vmor %vm949_vm12, %vm950_vm11 }
 0x76f   : > { %v945_v48 = vmul.f32 %v1224_v46, %v944_v47 }
 0x771   : > { %v946_v49 = vmul.f32 0.5, %v945_v48 }
 0x773   : > { %v947_v50 = vsub.f32 1.5, %v946_v49 }
 0x775   : > { %v948_v51 = vmul.f32 %v1224_v46, %v947_v50 }
 0x777   : > { %v952_v53 = vsel %vm951_vm13, %v1224_v46, %v948_v51 }
 0x778   : > { %v953_v54 = vmul.f32 %v952_v53, %v936_v40 }
 0x77a   : > { %v958_v56 = vmul.f32 %v1201_v52, %v953_v54 }
 0x77c   : > { %v963_v57 = vadd.f32 %v1202_v55, %v958_v56 }
 0x77e   : > { %964 = vst.msk [vmem:[%s457_s24] sm:$0xff] %vm485_vm0, %v963_v57 }
 0x77f   : > { %1294 = shalt.err (!%p1291_p8)
}
 0x780   : > { %1130 = dma.vmem_to_hbm [thread:$0]  (%p1473_p5), %s979_s0, 128, %s981_s1, %s966_s30  }
 0x781 PF: > { %p1142_p9 = scmp.ge.s32.totalorder %s1335_s20, 2  ;;  %s992_s28 = sand.u32 1, %s1323_s17  }
 0x782   : > { %s993_s25 = scalar_lea.sflag [#allocation6], %s992_s28 }
 0x783   : > { %p1137_p10 = pnand %p1142_p9, %p1477_p6 }
 0x785   : > { %p1138_p11 = pneg %p1137_p10 }
 0x787   : > { %1318 = dma.done.wait (%p1138_p11), %s993_s25, 128  }
 0x788   : > { %1320 = vsyncadd (%p1138_p11), %s993_s25, 4294967168  ;;  %s1654_s24 = sld [smem:[#allocation11_spill]]  ;;  %p33_p12 = scmp.ge.s32.totalorder %s1460_s22, 4  }
 0x789   : > { %s1655_s19 = sld [smem:[#allocation12_spill]]  ;;  %s1656_s17 = smov %s1327_s18 }
 0x78a   : > { %s1658_s20 = smov %s1460_s22  ;;  %35 = sbr.rel (!%p33_p12) target bundleno = 11 (0xb), region = 112 }
 0x78e   : > { %s1657_s18 = smov %s1654_s24 }
 0x78f   :  { %999 = vsyncpa [#allocation5], 1 }
 0x790   :  { %1001 = vsyncpa [#allocation5 + $0x1], 1 }
 0x791   :  { %1002 = vsyncpa [#allocation6], 1 }
 0x792   :  { %1004 = vsyncpa [#allocation6 + $0x1], 1 }

</bundles_post_ra>
